<compile_context>
chip_gen: v7x
topology: tpu7x:2x2x1
jax: 0.10.0
libtpu: 0.0.40
codegen_flags: <defaults>
</compile_context>

<pallas_src>
import functools

import jax
import jax.numpy as jnp
from jax.experimental import pallas as pl
from jax.experimental.pallas import tpu as pltpu


def _tpu_memory_params():
    """Returns (scoped VMEM cap bytes, target HBM input bytes per grid step)."""
    phys = None
    try:
        phys = int(pltpu.get_tpu_info().vmem_capacity_bytes)
    except Exception:
        phys = None
    if phys is None:
        kind = ""
        try:
            kind = jax.devices()[0].device_kind.lower()
        except Exception:
            pass
        # v5e / v6e have 128 MiB of VMEM per core; anything we cannot
        # positively identify is treated as a 64 MiB part (v7x) to stay safe.
        phys = (128 << 20) if ("v5" in kind or "v6" in kind) else (64 << 20)
    vmem_cap = min(phys * 3 // 4, 96 << 20)            # ~0.75x physical
    step_bytes = (8 << 20) if phys <= (64 << 20) else (16 << 20)
    return int(vmem_cap), int(step_bytes)


def _dice_partial_kernel(x_ref, t_ref, inter_ref, sum_ref, inter_acc, sum_acc,
                         *, valid_elems, k_steps, tr, needs_mask):
    k = pl.program_id(1)

    @pl.when(k == 0)
    def _():
        inter_acc[...] = jnp.zeros_like(inter_acc)
        sum_acc[...] = jnp.zeros_like(sum_acc)

    preds = jax.nn.sigmoid(x_ref[...].astype(jnp.float32))   # (N, tr, 128)
    trues = t_ref[...].astype(jnp.float32)                   # (N, tr, 128)

    if needs_mask:
        # Element-level tail mask (replaces the old wrapper-side jnp.pad HBM
        # copy).  Must zero BOTH preds and trues: the out-of-range region holds
        # zero padding / stale VMEM and sigmoid(garbage) > 0.
        blk = pl.program_id(0) * k_steps + k
        row_ids = blk * tr + jax.lax.broadcasted_iota(jnp.int32, preds.shape, 1)
        lane_ids = jax.lax.broadcasted_iota(jnp.int32, preds.shape, 2)
        in_range = row_ids * 128 + lane_ids < valid_elems
        preds = jnp.where(in_range, preds, 0.0)
        trues = jnp.where(in_range, trues, 0.0)

    # Per-step work is elementwise VPU/EUP plus a VALU tree reduce (tr -> 8
    # rows): keeps the accumulators at one vreg per sample and off the vst
    # critical slot; no cross-lane/sublane XLU work in the streaming loop.
    n = preds.shape[0]
    sub = tr // 8
    inter_acc[...] += jnp.sum((preds * trues).reshape(n, sub, 8, 128), axis=1)
    sum_acc[...] += jnp.sum((preds + trues).reshape(n, sub, 8, 128), axis=1)

    @pl.when(k == k_steps - 1)
    def _():
        # Single XLU sublane reduce per core: (N, 8, 128) -> (N, 128).
        inter_ref[...] = jnp.sum(inter_acc[...], axis=1)[None]
        sum_ref[...] = jnp.sum(sum_acc[...], axis=1)[None]


def dice_loss(x, target, size_average=True):
    """Pallas equivalent of DiceLoss().forward(x, target) with weight=None.

    `target` may be any dtype the caller provides (f32 / bf16 / int8); the
    kernel upcasts to f32 internally, so a narrower target dtype directly cuts
    HBM traffic.  No wrapper-side astype is performed.
    """
    # TODO(synk): optional per-element `weight` argument not implemented
    # (module default is weight=None).
    num = x.shape[0]
    x2 = x.reshape(num, -1)
    t2 = target.reshape(num, -1)
    D = x2.shape[1]

    x_bytes = jnp.dtype(x2.dtype).itemsize
    t_bytes = jnp.dtype(t2.dtype).itemsize
    in_bytes = x_bytes + t_bytes

    vmem_cap, step_bytes = _tpu_memory_params()

    # Lane-dense view: (num, rows, 128).  Only pad (a real HBM copy) when the
    # reshape itself needs it; the ragged tail is otherwise masked in-kernel.
    rows = max(pl.cdiv(D, 128), 8)
    if rows * 128 != D:
        pad = rows * 128 - D
        x2 = jnp.pad(x2, ((0, 0), (0, pad)))    # pad value irrelevant: masked
        t2 = jnp.pad(t2, ((0, 0), (0, pad)))
    x3 = x2.reshape(num, rows, 128)
    t3 = t2.reshape(num, rows, 128)

    # Row tile: multiple of 8 sublanes, sized so one grid step moves about
    # `step_bytes` of input (amortizes ~0.35us/step pipeline overhead) while
    # double-buffered inputs + f32 temporaries stay inside the scoped-VMEM cap.
    fixed_vmem = 2 * num * 8 * 128 * 4 + 4 * num * 128 * 4 + (2 << 20)
    per_elem_vmem = 2 * in_bytes + 6 * 4        # 2x buffered inputs + f32 temps
    budget_elems = min((vmem_cap - fixed_vmem) // per_elem_vmem,
                       step_bytes // in_bytes)
    tr = max(8, min(int(budget_elems // (num * 128)) // 8 * 8, 4096))
    if rows >= 16:
        # Keep >= 2 row tiles so the leading "parallel" axis can use both
        # TensorCores on v7x (near-zero cost on single-core v5e/v6e).
        tr = min(tr, (pl.cdiv(rows, 2) + 7) // 8 * 8)
    tr = min(tr, (rows // 8) * 8)               # every block starts in-bounds

    row_tiles = pl.cdiv(rows, tr)
    p_axis = 2 if row_tiles >= 2 else 1
    k_steps = pl.cdiv(row_tiles, p_axis)
    needs_mask = p_axis * k_steps * tr * 128 > D      # grid touches > D elems
    overshoot = p_axis * k_steps > row_tiles          # grid rounds up in blocks

    def in_map(p, k):
        blk = p * k_steps + k
        if overshoot:                           # clamp fully-OOB trailing block
            blk = jnp.minimum(blk, row_tiles - 1)
        return (0, blk, 0)

    out_map = lambda p, k: (p, 0, 0)

    kernel = functools.partial(_dice_partial_kernel, valid_elems=D,
                               k_steps=k_steps, tr=tr, needs_mask=needs_mask)

    inter_out, sum_out = pl.pallas_call(
        kernel,
        out_shape=(
            jax.ShapeDtypeStruct((p_axis, num, 128), jnp.float32),
            jax.ShapeDtypeStruct((p_axis, num, 128), jnp.float32),
        ),
        grid_spec=pltpu.PrefetchScalarGridSpec(
            num_scalar_prefetch=0,
            grid=(p_axis, k_steps),
            in_specs=[
                pl.BlockSpec((num, tr, 128), in_map),
                pl.BlockSpec((num, tr, 128), in_map),
            ],
            out_specs=[
                pl.BlockSpec((1, num, 128), out_map),
                pl.BlockSpec((1, num, 128), out_map),
            ],
            scratch_shapes=[
                pltpu.VMEM((num, 8, 128), jnp.float32),
                pltpu.VMEM((num, 8, 128), jnp.float32),
            ],
        ),
        compiler_params=pltpu.CompilerParams(
            dimension_semantics=("parallel", "arbitrary"),
            vmem_limit_bytes=int(vmem_cap)),
    )(x3, t3)

    # Tiny O(N) epilogue in plain JAX (kernel outputs stay lane-dense).
    inter = jnp.sum(inter_out, axis=(0, 2))     # sum(sigmoid(x) * t) per sample
    denom = jnp.sum(sum_out, axis=(0, 2))       # sum(sigmoid(x)) + sum(t)
    scores = 2.0 * (inter + 1.0) / (denom + 1.0)
    score = jnp.sum(scores)
    if size_average:
        score = score / num
    return 1.0 - jnp.clip(score, 0.0, 1.0)


def dice_loss_ref(x, target, size_average=True):
    num = x.shape[0]
    preds = jax.nn.sigmoid(x).reshape(num, -1).astype(jnp.float32)
    trues = target.reshape(num, -1).astype(jnp.float32)
    inter = jnp.sum(preds * trues, axis=1)
    scores = 2.0 * (inter + 1.0) / (jnp.sum(preds, 1) + jnp.sum(trues, 1) + 1.0)
    score = jnp.sum(scores)
    if size_average:
        score = score / num
    return 1.0 - jnp.clip(score, 0.0, 1.0)


if __name__ == "__main__":
    key = jax.random.PRNGKey(0)

    def make_inputs(shape, k):
        kx, kt = jax.random.split(k)
        x = jax.random.normal(kx, shape, dtype=jnp.float32)
        t = (jax.random.uniform(kt, shape) > 0.5).astype(jnp.float32)
        return x, t

    shapes = [
        (2, 4, 16, 16),   # lane-aligned, single tile
        (2, 3, 10, 10),   # ragged tail -> in-kernel element mask
        (2, 4, 64, 64),   # >= 2 row tiles -> leading "parallel" axis exercised
    ]
    for shape in shapes:
        key, sub = jax.random.split(key)
        x, t = make_inputs(shape, sub)
        loss = jax.block_until_ready(dice_loss(x, t))
        ref = jax.block_until_ready(dice_loss_ref(x, t))
        assert jnp.allclose(loss, ref, atol=1e-5, rtol=1e-5), (shape, loss, ref)
    print("KERNEL_OK")
</pallas_src>

<mosaic_0001>
module attributes {stable_mosaic.version = 11 : i64} {
  func.func @_dice_partial_kernel(%arg0: i32, %arg1: i32, %arg2: memref<2x8x128xf32, #tpu.memory_space<vmem>>, %arg3: memref<2x8x128xf32, #tpu.memory_space<vmem>>, %arg4: memref<1x2x128xf32, #tpu.memory_space<vmem>>, %arg5: memref<1x2x128xf32, #tpu.memory_space<vmem>>, %arg6: memref<2x8x128xf32, #tpu.memory_space<vmem>>, %arg7: memref<2x8x128xf32, #tpu.memory_space<vmem>>) attributes {dimension_semantics = [#tpu.dimension_semantics<parallel>, #tpu.dimension_semantics<arbitrary>], iteration_bounds = array<i64: 1, 1>, scalar_prefetch = 0 : i64, scratch_operands = 2 : i64, tpu.core_type = #tpu.core_type<tc>, window_params = [{transform_indices = @transform_0, window_bounds = array<i64: 2, 8, 128>}, {transform_indices = @transform_1, window_bounds = array<i64: 2, 8, 128>}, {transform_indices = @transform_2, window_bounds = array<i64: 1, 2, 128>}, {transform_indices = @transform_3, window_bounds = array<i64: 1, 2, 128>}]} {
    %c0_i32 = arith.constant 0 : i32
    %0 = arith.cmpi eq, %arg1, %c0_i32 : i32
    %1 = arith.extui %0 : i1 to i32
    %c0_i32_0 = arith.constant 0 : i32
    %2 = arith.cmpi ne, %1, %c0_i32_0 : i32
    scf.if %2 {
      %cst_22 = arith.constant 0.000000e+00 : f32
      %25 = vector.broadcast %cst_22 : f32 to vector<2x8x128xf32>
      %c0_23 = arith.constant 0 : index
      %c0_24 = arith.constant 0 : index
      %c0_25 = arith.constant 0 : index
      %26 = vector.load %arg6[%c0_23, %c0_24, %c0_25] : memref<2x8x128xf32, #tpu.memory_space<vmem>>, vector<2x8x128xf32>
      tpu.vector_store %arg6[%c0_23, %c0_24, %c0_25], %25 {strides = array<i32>} : memref<2x8x128xf32, #tpu.memory_space<vmem>>, vector<2x8x128xf32>,
      %cst_26 = arith.constant 0.000000e+00 : f32
      %27 = vector.broadcast %cst_26 : f32 to vector<2x8x128xf32>
      %c0_27 = arith.constant 0 : index
      %c0_28 = arith.constant 0 : index
      %c0_29 = arith.constant 0 : index
      %28 = vector.load %arg7[%c0_27, %c0_28, %c0_29] : memref<2x8x128xf32, #tpu.memory_space<vmem>>, vector<2x8x128xf32>
      tpu.vector_store %arg7[%c0_27, %c0_28, %c0_29], %27 {strides = array<i32>} : memref<2x8x128xf32, #tpu.memory_space<vmem>>, vector<2x8x128xf32>,
    } else {
    }
    %c0 = arith.constant 0 : index
    %c0_1 = arith.constant 0 : index
    %c0_2 = arith.constant 0 : index
    %3 = vector.load %arg2[%c0, %c0_1, %c0_2] : memref<2x8x128xf32, #tpu.memory_space<vmem>>, vector<2x8x128xf32>
    %4 = arith.negf %3 : vector<2x8x128xf32>
    %5 = math.exp %4 : vector<2x8x128xf32>
    %cst = arith.constant 1.000000e+00 : f32
    %6 = vector.broadcast %cst : f32 to vector<2x8x128xf32>
    %7 = arith.addf %6, %5 : vector<2x8x128xf32>
    %8 = arith.divf %6, %7 : vector<2x8x128xf32>
    %c0_3 = arith.constant 0 : index
    %c0_4 = arith.constant 0 : index
    %c0_5 = arith.constant 0 : index
    %9 = vector.load %arg3[%c0_3, %c0_4, %c0_5] : memref<2x8x128xf32, #tpu.memory_space<vmem>>, vector<2x8x128xf32>
    %c0_6 = arith.constant 0 : index
    %c0_7 = arith.constant 0 : index
    %c0_8 = arith.constant 0 : index
    %10 = vector.load %arg6[%c0_6, %c0_7, %c0_8] : memref<2x8x128xf32, #tpu.memory_space<vmem>>, vector<2x8x128xf32>
    %11 = arith.mulf %8, %9 : vector<2x8x128xf32>
    %12 = vector.shape_cast %11 : vector<2x8x128xf32> to vector<2x1x8x128xf32>
    %cst_9 = arith.constant dense<0.000000e+00> : vector<2x8x128xf32>
    %13 = vector.multi_reduction <add>, %12, %cst_9 [1] : vector<2x1x8x128xf32> to vector<2x8x128xf32>
    %14 = arith.addf %10, %13 : vector<2x8x128xf32>
    %c0_10 = arith.constant 0 : index
    %c0_11 = arith.constant 0 : index
    %c0_12 = arith.constant 0 : index
    %15 = vector.load %arg6[%c0_10, %c0_11, %c0_12] : memref<2x8x128xf32, #tpu.memory_space<vmem>>, vector<2x8x128xf32>
    tpu.vector_store %arg6[%c0_10, %c0_11, %c0_12], %14 {strides = array<i32>} : memref<2x8x128xf32, #tpu.memory_space<vmem>>, vector<2x8x128xf32>,
    %c0_13 = arith.constant 0 : index
    %c0_14 = arith.constant 0 : index
    %c0_15 = arith.constant 0 : index
    %16 = vector.load %arg7[%c0_13, %c0_14, %c0_15] : memref<2x8x128xf32, #tpu.memory_space<vmem>>, vector<2x8x128xf32>
    %17 = arith.addf %8, %9 : vector<2x8x128xf32>
    %18 = vector.shape_cast %17 : vector<2x8x128xf32> to vector<2x1x8x128xf32>
    %cst_16 = arith.constant dense<0.000000e+00> : vector<2x8x128xf32>
    %19 = vector.multi_reduction <add>, %18, %cst_16 [1] : vector<2x1x8x128xf32> to vector<2x8x128xf32>
    %20 = arith.addf %16, %19 : vector<2x8x128xf32>
    %c0_17 = arith.constant 0 : index
    %c0_18 = arith.constant 0 : index
    %c0_19 = arith.constant 0 : index
    %21 = vector.load %arg7[%c0_17, %c0_18, %c0_19] : memref<2x8x128xf32, #tpu.memory_space<vmem>>, vector<2x8x128xf32>
    tpu.vector_store %arg7[%c0_17, %c0_18, %c0_19], %20 {strides = array<i32>} : memref<2x8x128xf32, #tpu.memory_space<vmem>>, vector<2x8x128xf32>,
    %c0_i32_20 = arith.constant 0 : i32
    %22 = arith.cmpi eq, %arg1, %c0_i32_20 : i32
    %23 = arith.extui %22 : i1 to i32
    %c0_i32_21 = arith.constant 0 : i32
    %24 = arith.cmpi ne, %23, %c0_i32_21 : i32
    scf.if %24 {
      %c0_22 = arith.constant 0 : index
      %c0_23 = arith.constant 0 : index
      %c0_24 = arith.constant 0 : index
      %25 = vector.load %arg6[%c0_22, %c0_23, %c0_24] : memref<2x8x128xf32, #tpu.memory_space<vmem>>, vector<2x8x128xf32>
      %cst_25 = arith.constant dense<0.000000e+00> : vector<2x128xf32>
      %26 = vector.multi_reduction <add>, %25, %cst_25 [1] : vector<2x8x128xf32> to vector<2x128xf32>
      %27 = vector.shape_cast %26 : vector<2x128xf32> to vector<1x2x128xf32>
      %c0_26 = arith.constant 0 : index
      %c0_27 = arith.constant 0 : index
      %c0_28 = arith.constant 0 : index
      %28 = vector.load %arg4[%c0_26, %c0_27, %c0_28] : memref<1x2x128xf32, #tpu.memory_space<vmem>>, vector<1x2x128xf32>
      tpu.vector_store %arg4[%c0_26, %c0_27, %c0_28], %27 {strides = array<i32>} : memref<1x2x128xf32, #tpu.memory_space<vmem>>, vector<1x2x128xf32>,
      %c0_29 = arith.constant 0 : index
      %c0_30 = arith.constant 0 : index
      %c0_31 = arith.constant 0 : index
      %29 = vector.load %arg7[%c0_29, %c0_30, %c0_31] : memref<2x8x128xf32, #tpu.memory_space<vmem>>, vector<2x8x128xf32>
      %cst_32 = arith.constant dense<0.000000e+00> : vector<2x128xf32>
      %30 = vector.multi_reduction <add>, %29, %cst_32 [1] : vector<2x8x128xf32> to vector<2x128xf32>
      %31 = vector.shape_cast %30 : vector<2x128xf32> to vector<1x2x128xf32>
      %c0_33 = arith.constant 0 : index
      %c0_34 = arith.constant 0 : index
      %c0_35 = arith.constant 0 : index
      %32 = vector.load %arg5[%c0_33, %c0_34, %c0_35] : memref<1x2x128xf32, #tpu.memory_space<vmem>>, vector<1x2x128xf32>
      tpu.vector_store %arg5[%c0_33, %c0_34, %c0_35], %31 {strides = array<i32>} : memref<1x2x128xf32, #tpu.memory_space<vmem>>, vector<1x2x128xf32>,
    } else {
    }
    return
  }
  func.func @transform_0(%arg0: i32, %arg1: i32) -> (i32, i32, i32) {
    %c1_i32 = arith.constant 1 : i32
    %0 = arith.muli %arg0, %c1_i32 : i32
    %1 = arith.addi %0, %arg1 : i32
    %c0_i32 = arith.constant 0 : i32
    %c0_i32_0 = arith.constant 0 : i32
    %c0_i32_1 = arith.constant 0 : i32
    return %c0_i32, %1, %c0_i32_0 : i32, i32, i32
  }
  func.func @transform_1(%arg0: i32, %arg1: i32) -> (i32, i32, i32) {
    %c1_i32 = arith.constant 1 : i32
    %0 = arith.muli %arg0, %c1_i32 : i32
    %1 = arith.addi %0, %arg1 : i32
    %c0_i32 = arith.constant 0 : i32
    %c0_i32_0 = arith.constant 0 : i32
    %c0_i32_1 = arith.constant 0 : i32
    return %c0_i32, %1, %c0_i32_0 : i32, i32, i32
  }
  func.func @transform_2(%arg0: i32, %arg1: i32) -> (i32, i32, i32) {
    %c0_i32 = arith.constant 0 : i32
    %c0_i32_0 = arith.constant 0 : i32
    %c0_i32_1 = arith.constant 0 : i32
    return %arg0, %c0_i32, %c0_i32_0 : i32, i32, i32
  }
  func.func @transform_3(%arg0: i32, %arg1: i32) -> (i32, i32, i32) {
    %c0_i32 = arith.constant 0 : i32
    %c0_i32_0 = arith.constant 0 : i32
    %c0_i32_1 = arith.constant 0 : i32
    return %arg0, %c0_i32, %c0_i32_0 : i32, i32, i32
  }
}

</mosaic_0001>

<bundles_post_ra>
// kernel: tpu_custom_call.1
= control target key start
LH: loop header
LB: loop body
LE: loop exit
PB: predicated region body
PF: predicated region fallthrough
CT: control target
= control target key end

     0   :  { %9 = vsyncpa [#allocation5], 0  ;;  %s353_s0 = inlined_call_operand.hbm [shape: f32[2,8,128], index: 0, kind: input, shape index: {}]   ;;  %s354_s1 = inlined_call_operand.hbm [shape: f32[2,8,128], index: 1, kind: input, shape index: {}]   ;;  %s355_s2 = inlined_call_operand.hbm [shape: f32[1,2,128], index: 2, kind: output, shape index: {0}]   ;;  %s356_s3 = inlined_call_operand.hbm [shape: f32[1,2,128], index: 3, kind: output, shape index: {1}]  }
   0x1   :  { %10 = vsyncpa [#allocation8], 0 }
   0x2   :  { %11 = vsyncpa [#allocation6], 0 }
   0x3   :  { %12 = vsyncpa [#allocation11], 0  ;;  %s279_s12 = smov [#allocation4]   ;;  %s183_s16 = scalar_lea.hbm %s353_s0, 256 }
   0x4   :  { %s21_s13 = sshll.u32 %s279_s12, 4  ;;  %p184_p0 = scmp.ne.s32.totalorder %s353_s0, %s183_s16  ;;  %s22_s13 = int_to_ptr.vmem [resolvable:$true] %s21_s13 }
   0x5   :  { %p187_p1 = scmp.lt.u32.totalorder %s183_s16, %s353_s0 }
   0x7   :  { %p189_p2 = pnand %p187_p1, %p184_p0 }
   0x9   :  { %192 = shalt.err (!%p189_p2)
}
   0xa   :  { %s193_s21 = scalar_lea.vmem %s22_s13, 256  ;;  %p198_p4 = scmp.lt.s32.totalorder %s22_s13, %s22_s13 }
   0xb   :  { %p194_p3 = scmp.ne.s32.totalorder %s22_s13, %s193_s21  ;;  %p199_p5 = scmp.lt.s32.totalorder %s193_s21, %s193_s21 }
   0xd   :  { %p200_p6 = por %p199_p5, %p198_p4 }
   0xf   :  { %p201_p7 = pnand %p200_p6, %p194_p3 }
  0x11   :  { %204 = shalt.err (!%p201_p7)
}
  0x12   :  { %s280_s22 = smov 128   ;;  %s281_s23 = smov 8  }
  0x13   :  { %27 = dma.hbm_to_vmem [thread:$0]  %s353_s0, 256, %s22_s13, [#allocation5], %s280_s22, %s280_s22, %s281_s23  }
  0x14   :  { %s282_s26 = smov [#allocation7]   ;;  %s205_s30 = scalar_lea.hbm %s354_s1, 256 }
  0x15   :  { %s36_s27 = sshll.u32 %s282_s26, 4  ;;  %p206_p8 = scmp.ne.s32.totalorder %s354_s1, %s205_s30  ;;  %s37_s27 = int_to_ptr.vmem [resolvable:$true] %s36_s27 }
  0x16   :  { %p209_p9 = scmp.lt.u32.totalorder %s205_s30, %s354_s1 }
  0x18   :  { %p211_p10 = pnand %p209_p9, %p206_p8 }
  0x1a   :  { %214 = shalt.err (!%p211_p10)
}
  0x1b   :  { %s215_s8 = scalar_lea.vmem %s37_s27, 256  ;;  %p220_p12 = scmp.lt.s32.totalorder %s37_s27, %s37_s27 }
  0x1c   :  { %p216_p11 = scmp.ne.s32.totalorder %s37_s27, %s215_s8  ;;  %p221_p13 = scmp.lt.s32.totalorder %s215_s8, %s215_s8 }
  0x1e   :  { %p222_p0 = por %p221_p13, %p220_p12 }
  0x20   :  { %p223_p1 = pnand %p222_p0, %p216_p11 }
  0x22   :  { %226 = shalt.err (!%p223_p1)
}
  0x23   :  { %42 = dma.hbm_to_vmem [thread:$0]  %s354_s1, 256, %s37_s27, [#allocation8], %s280_s22, %s280_s22, %s281_s23  }
  0x24   :  { %271 = dma.done.wait [#allocation5], 256  }
  0x25   :  { %272 = vsyncadd [#allocation5], 4294967040 }
  0x26   :  { %273 = dma.done.wait [#allocation8], 256  }
  0x27   :  { %274 = vsyncadd [#allocation8], 4294967040  ;;  %v59_v0 = vld [vmem:[#allocation4] sm:$0xff]  ;;  %v60_v1 = vld [vmem:[#allocation4 + $0x8] sm:$0xff]  ;;  %s283_s1 = smov [#allocation9]   ;;  %vm114_vm0 = vcmask 1041409  }
  0x28   :  { %v167_v2 = vmul.f32 -1.442695, %v59_v0  ;;  %v168_v3 = vmul.f32 -1.442695, %v60_v1  ;;  %v73_v8 = vld [vmem:[#allocation7] sm:$0xff]  ;;  %v74_v9 = vld [vmem:[#allocation7 + $0x8] sm:$0xff] }
  0x29   :  { %s143_s10 = sshll.u32 %s283_s1, 4  ;;  %s284_s11 = smov [#allocation10]   ;;  %s144_s10 = int_to_ptr.vmem [resolvable:$true] %s143_s10 }
  0x2a   :  { %175 = vpow2.f32 %v167_v2  ;;  %s153_s12 = sshll.u32 %s284_s11, 4  ;;  %s227_s13 = scalar_lea.vmem %s144_s10, 32  ;;  %s154_s12 = int_to_ptr.vmem [resolvable:$true] %s153_s12 }
  0x2b   :  { %177 = vpow2.f32 %v168_v3  ;;  %p228_p2 = scmp.ne.s32.totalorder %s144_s10, %s227_s13  ;;  %p232_p3 = scmp.lt.s32.totalorder %s144_s10, %s144_s10 }
  0x2c   :  { %p233_p4 = scmp.lt.s32.totalorder %s227_s13, %s227_s13 }
  0x2e   :  { %p234_p5 = por %p233_p4, %p232_p3 }
  0x30   :  { %p235_p6 = pnand %p234_p5, %p228_p2 }
  0x34   :  { %v176_v4 = vpop.eup %175 }
  0x35   :  { %v178_v5 = vpop.eup %177  ;;  %v67_v6 = vadd.f32 1.0, %v176_v4 }
  0x36   :  { %v68_v7 = vadd.f32 1.0, %v178_v5 }
  0x37   :  { %179 = vrcp.f32 %v67_v6 }
  0x38   :  { %181 = vrcp.f32 %v68_v7 }
  0x41   :  { %v180_v10 = vpop.eup %179 }
  0x42   :  { %v182_v11 = vpop.eup %181  ;;  %v77_v12 = vmul.f32 %v180_v10, %v73_v8  ;;  %v87_v13 = vadd.f32 %v180_v10, %v73_v8 }
  0x43   :  { %v78_v14 = vmul.f32 %v182_v11, %v74_v9  ;;  %v88_v15 = vadd.f32 %v182_v11, %v74_v9 }
  0x44   :  { %v100_v16 = vrot.slane %v77_v12, 4  ;;  %v120_v17 = vrot.slane %v87_v13, 4 }
  0x45   :  { %v106_v18 = vrot.slane %v78_v14, 4  ;;  %v126_v19 = vrot.slane %v88_v15, 4 }
  0x46   :  { %v101_v20 = vadd.f32 %v100_v16, %v77_v12  ;;  %v121_v21 = vadd.f32 %v120_v17, %v87_v13 }
  0x47   :  { %v107_v22 = vadd.f32 %v106_v18, %v78_v14  ;;  %v127_v23 = vadd.f32 %v126_v19, %v88_v15 }
  0x48   :  { %v102_v24 = vrot.slane %v101_v20, 2  ;;  %v122_v25 = vrot.slane %v121_v21, 2 }
  0x49   :  { %v108_v26 = vrot.slane %v107_v22, 2  ;;  %v128_v27 = vrot.slane %v127_v23, 2 }
  0x4a   :  { %v103_v28 = vadd.f32 %v102_v24, %v101_v20  ;;  %v123_v29 = vadd.f32 %v122_v25, %v121_v21 }
  0x4b   :  { %v109_v30 = vadd.f32 %v108_v26, %v107_v22  ;;  %v129_v31 = vadd.f32 %v128_v27, %v127_v23 }
  0x4c   :  { %v104_v32 = vrot.slane %v103_v28, 1  ;;  %v124_v33 = vrot.slane %v123_v29, 1 }
  0x4d   :  { %v110_v34 = vrot.slane %v109_v30, 1  ;;  %v130_v35 = vrot.slane %v129_v31, 1 }
  0x4e   :  { %v105_v36 = vadd.f32 %v104_v32, %v103_v28  ;;  %v125_v37 = vadd.f32 %v124_v33, %v123_v29 }
  0x4f   :  { %v111_v38 = vadd.f32 %v110_v34, %v109_v30  ;;  %v131_v39 = vadd.f32 %v130_v35, %v129_v31 }
  0x51   :  { %v115_v40 = vsel %vm114_vm0, %v111_v38, %v105_v36  ;;  %v134_v41 = vsel %vm114_vm0, %v131_v39, %v125_v37 }
  0x52   :  { %117 = vst [vmem:[#allocation9] sm:$0x3] %v115_v40  ;;  %136 = vst [vmem:[#allocation10] sm:$0x3] %v134_v41 }
  0x53   :  { %238 = shalt.err (!%p235_p6)
}
  0x54   :  { %s239_s16 = scalar_lea.hbm %s355_s2, 32 }
  0x55   :  { %p240_p7 = scmp.ne.s32.totalorder %s355_s2, %s239_s16  ;;  %p243_p8 = scmp.lt.u32.totalorder %s239_s16, %s355_s2 }
  0x57   :  { %p245_p9 = pnand %p243_p8, %p240_p7 }
  0x59   :  { %248 = shalt.err (!%p245_p9)
}
  0x5a   :  { %146 = dma.vmem_to_hbm [thread:$0]  %s144_s10, 32, %s355_s2, [#allocation6]  }
  0x5b   :  { %s249_s23 = scalar_lea.vmem %s154_s12, 32  ;;  %p254_p11 = scmp.lt.s32.totalorder %s154_s12, %s154_s12 }
  0x5c   :  { %p250_p10 = scmp.ne.s32.totalorder %s154_s12, %s249_s23  ;;  %p255_p12 = scmp.lt.s32.totalorder %s249_s23, %s249_s23 }
  0x5e   :  { %p256_p13 = por %p255_p12, %p254_p11 }
  0x60   :  { %p257_p0 = pnand %p256_p13, %p250_p10 }
  0x62   :  { %260 = shalt.err (!%p257_p0)
}
  0x63   :  { %s261_s26 = scalar_lea.hbm %s356_s3, 32 }
  0x64   :  { %p262_p1 = scmp.ne.s32.totalorder %s356_s3, %s261_s26  ;;  %p265_p2 = scmp.lt.u32.totalorder %s261_s26, %s356_s3 }
  0x66   :  { %p267_p3 = pnand %p265_p2, %p262_p1 }
  0x68   :  { %270 = shalt.err (!%p267_p3)
}
  0x69   :  { %156 = dma.vmem_to_hbm [thread:$0]  %s154_s12, 32, %s356_s3, [#allocation11]  }
  0x6a   :  { %275 = dma.done.wait [#allocation6], 32  }
  0x6b   :  { %276 = vsyncadd [#allocation6], 4294967264 }
  0x6c   :  { %277 = dma.done.wait [#allocation11], 32  }
  0x6d   :  { %278 = vsyncadd [#allocation11], 4294967264 }
  0x6e   :  { %163 = vsyncpa [#allocation5], 1 }
  0x6f   :  { %164 = vsyncpa [#allocation8], 1 }
  0x70   :  { %165 = vsyncpa [#allocation6], 1 }
  0x71   :  { %166 = vsyncpa [#allocation11], 1 }

</bundles_post_ra>
